<compile_context>
chip_gen: v5e
topology: v5e:2x2
jax: 0.10.0
libtpu: 0.0.40
codegen_flags: <defaults>
</compile_context>

<pallas_src>
import functools

import jax
import jax.numpy as jnp
import numpy as np
from jax.experimental import pallas as pl
from jax.experimental.pallas import tpu as pltpu

INPUT_DIM = 1
HIDDEN = 49      # LMU hidden units
ORDER = 4        # memory order d
THETA = 4.0      # window length

HP = 64          # hidden padded (sublane-clean)
SW = 128         # fused state width = one full lane tile: [h (64) | m (4) | zeros]


def _lmu_state_space(order, theta, dt=1.0):
    """Continuous-time LMU (A, B), discretized with zero-order hold."""
    q = np.arange(order, dtype=np.float64)
    r = (2.0 * q + 1.0)[:, None] / theta
    i, j = np.meshgrid(q, q, indexing="ij")
    a_cont = r * np.where(i < j, -1.0, (-1.0) ** (i - j + 1.0))
    b_cont = r * ((-1.0) ** q)[:, None]
    aug = np.zeros((order + 1, order + 1), dtype=np.float64)
    aug[:order, :order] = a_cont * dt
    aug[:order, order:] = b_cont * dt
    exp_aug = np.asarray(jax.scipy.linalg.expm(jnp.asarray(aug, dtype=jnp.float32)))
    return (exp_aug[:order, :order].astype(np.float32),
            exp_aug[:order, order:].astype(np.float32))


def init_params(key):
    """Deterministic synthetic parameters with the shapes implied by the module."""
    ks = jax.random.split(key, 8)

    def unif(k, shape, scale):
        return jax.random.uniform(k, shape, jnp.float32, -scale, scale)

    params = dict(
        e_x=unif(ks[0], (1, INPUT_DIM), 1.0),
        e_h=unif(ks[1], (1, HIDDEN), 1.0 / np.sqrt(HIDDEN)),
        # nonzero e_m so the m->u coupling (part of the rank-1 fold) is exercised
        e_m=unif(ks[7], (1, ORDER), 0.1),
        W_x=jax.random.normal(ks[2], (HIDDEN, INPUT_DIM), jnp.float32)
        * np.sqrt(2.0 / (HIDDEN + INPUT_DIM)),
        W_h=jax.random.normal(ks[3], (HIDDEN, HIDDEN), jnp.float32)
        * np.sqrt(1.0 / HIDDEN),
        W_m=jax.random.normal(ks[4], (HIDDEN, ORDER), jnp.float32)
        * np.sqrt(2.0 / (HIDDEN + ORDER)),
        dense_w=unif(ks[5], (1, HIDDEN), 1.0 / np.sqrt(HIDDEN)),
        dense_b=unif(ks[6], (1, 1), 1.0 / np.sqrt(HIDDEN)),
    )
    Ad, Bd = _lmu_state_space(ORDER, THETA)
    params["A"] = jnp.asarray(Ad)          # (ORDER, ORDER)
    params["B"] = jnp.asarray(Bd)          # (ORDER, 1)
    return params


def _prep_fused_params(params):
    """Pad to 64/128-wide tiles and fuse the whole recurrence into one (128,128) matrix.

    With s = [h, m] (padded to width 128) and the rank-1 u-term folded in:
      z_t   = x_t * wxu + s_{t-1} @ Wf'
      h_t   = tanh(z_t[:, :HP]) ; m_t = z_t[:, HP:HP+ORDER]
    where Wf' = [W_h^T ; (W_m A)^T ; A^T] + outer(e_row, wu)
          wu  = [(W_m B)^T | B^T], e_row = [e_h | e_m], wxu = W_x + e_x * wu.
    Zero-padding of rows 49..63 keeps padded hidden lanes exactly zero.
    """
    H, O = HIDDEN, ORDER
    A, Bm = params["A"], params["B"]

    Whp = jnp.zeros((HP, HP), jnp.float32).at[:H, :H].set(params["W_h"])
    Wmp = jnp.zeros((HP, O), jnp.float32).at[:H, :].set(params["W_m"])

    wxp = jnp.zeros((SW,), jnp.float32).at[:H].set(params["W_x"][:, 0])
    ehp = jnp.zeros((SW,), jnp.float32).at[:H].set(params["e_h"][0])
    emp = jnp.zeros((SW,), jnp.float32).at[HP:HP + O].set(params["e_m"][0])
    dwp = jnp.zeros((SW,), jnp.float32).at[:H].set(params["dense_w"][0])

    wu = jnp.zeros((SW,), jnp.float32)
    wu = wu.at[:HP].set((Wmp @ Bm)[:, 0])           # u * (W_m B)^T
    wu = wu.at[HP:HP + O].set(Bm[:, 0])             # u * B^T

    wf = jnp.zeros((SW, SW), jnp.float32)
    wf = wf.at[:HP, :HP].set(Whp.T)                 # h @ W_h^T
    wf = wf.at[HP:HP + O, :HP].set((Wmp @ A).T)     # m @ (W_m A)^T
    wf = wf.at[HP:HP + O, HP:HP + O].set(A.T)       # m @ A^T

    e_row = ehp + emp                               # disjoint lane ranges -> concat
    wf = wf + jnp.outer(e_row, wu)                  # rank-1 fold of (s . e_row) * wu

    ex = params["e_x"][0, 0]
    wxu = wxp + ex * wu                             # x multiplies this row directly

    rows = jnp.zeros((8, SW), jnp.float32)          # stacked (1,128) params -> one tile
    rows = rows.at[0].set(wxu)
    rows = rows.at[1].set(dwp)
    bias = params["dense_b"].reshape(1, 1)
    return rows, wf, bias


def _lmu_chunk_kernel(x_ref, rows_ref, wf_ref, b_ref, out_ref, s_scr, *, tc, unroll):
    @pl.when(pl.program_id(0) == 0)
    def _():
        s_scr[...] = jnp.zeros_like(s_scr)

    x_blk = x_ref[...]                          # (BP, TC)  lane-dense input chunk
    wxu_row = rows_ref[0:1, :]                  # (1, SW)
    dw_row = rows_ref[1:2, :]                   # (1, SW)  dense head weights (zero-padded)
    wf = wf_ref[...]                            # (SW, SW) fused recurrent weight (loop-invariant)
    bp = s_scr.shape[0]

    lane_t = jax.lax.broadcasted_iota(jnp.int32, (1, tc), 1)            # time lanes
    h_mask = jax.lax.broadcasted_iota(jnp.int32, (bp, SW), 1) < HP      # tanh on h lanes only

    def step(t, carry):
        s, y_acc = carry
        onehot = lane_t == t
        # x_t[b] gathered from the lane-dense chunk; independent of the carry, so this
        # VPU/XLU work overlaps with the MXU/EUP latency of the recurrence itself.
        x_t = jnp.sum(jnp.where(onehot, x_blk, 0.0), axis=1, keepdims=True)   # (BP, 1)
        pre = jnp.dot(s, wf, preferred_element_type=jnp.float32)              # one MXU push
        z = x_t * wxu_row + pre                                                # (BP, SW)
        s_new = jnp.where(h_mask, jnp.tanh(z), z)                              # EUP tanh + select
        # Dense head per step, off the carry chain, scattered into the lane-dense output.
        y_t = jnp.sum(s_new * dw_row, axis=1, keepdims=True)                   # (BP, 1)
        y_acc = y_acc + jnp.where(onehot, y_t, 0.0)                            # (BP, TC)
        return s_new, y_acc

    init = (s_scr[...], jnp.zeros((bp, tc), jnp.float32))
    s_final, y_acc = jax.lax.fori_loop(0, tc, step, init, unroll=unroll)
    s_scr[...] = s_final                        # carry state to the next time chunk
    out_ref[...] = (y_acc + b_ref[0, 0]).astype(out_ref.dtype)   # one lane-dense store


@jax.jit
def lmu_model_forward(x, params):
    B, T, _ = x.shape
    BP = max(8, -(-B // 8) * 8)                 # batch padded to sublane multiple (one block)
    TC = T if T <= 128 else 128                 # time-chunk length (lane width of x / y)
    NC = -(-T // TC)
    TP = NC * TC

    # Batch-major, time-in-lanes layout: contiguous, lane-dense DMA per chunk.
    x_bt = jnp.pad(x.astype(jnp.float32)[..., 0], ((0, BP - B), (0, TP - T)))

    rows, wf, bias = _prep_fused_params(params)

    unroll = TC if TC <= 16 else 8
    kernel = functools.partial(_lmu_chunk_kernel, tc=TC, unroll=unroll)

    grid_spec = pltpu.PrefetchScalarGridSpec(
        num_scalar_prefetch=0,
        grid=(NC,),
        in_specs=[
            pl.BlockSpec((BP, TC), lambda c: (0, c)),                  # x chunk (lane-dense)
            pl.BlockSpec((8, SW), lambda c: (0, 0)),                   # stacked param rows
            pl.BlockSpec((SW, SW), lambda c: (0, 0)),                  # fused Wf
            pl.BlockSpec(memory_space=pltpu.MemorySpace.SMEM),         # dense bias scalar
        ],
        out_specs=pl.BlockSpec((BP, TC), lambda c: (0, c)),            # lane-dense output
        scratch_shapes=[pltpu.VMEM((BP, SW), jnp.float32)],            # carried [h | m] state
    )

    y_bt = pl.pallas_call(
        kernel,
        out_shape=jax.ShapeDtypeStruct((BP, TP), jnp.float32),
        grid_spec=grid_spec,
        compiler_params=pltpu.CompilerParams(dimension_semantics=("arbitrary",)),
    )(x_bt, rows, wf, bias)

    return y_bt[:B, :T][..., None]              # (B, T, 1) -- no host transpose needed


def lmu_model_reference(x, params):
    """Plain-JAX reference (unfused, step-by-step) for correctness checking."""
    B, T, _ = x.shape
    ex, eh, em = params["e_x"], params["e_h"], params["e_m"]
    wx, wh, wm = params["W_x"], params["W_h"], params["W_m"]
    A, Bm = params["A"], params["B"]

    def step(carry, x_t):
        h, m = carry
        u = x_t @ ex.T + h @ eh.T + m @ em.T
        m = m @ A.T + u @ Bm.T
        h = jnp.tanh(x_t @ wx.T + h @ wh.T + m @ wm.T)
        return (h, m), h

    x_tm = jnp.transpose(x, (1, 0, 2)).astype(jnp.float32)
    h0 = jnp.zeros((B, HIDDEN), jnp.float32)
    m0 = jnp.zeros((B, ORDER), jnp.float32)
    _, hs = jax.lax.scan(step, (h0, m0), x_tm)                    # (T, B, HIDDEN)
    y = hs @ params["dense_w"].T + params["dense_b"].reshape(1,)
    return jnp.transpose(y, (1, 0, 2))                            # (B, T, 1)


if __name__ == "__main__":
    key = jax.random.PRNGKey(0)
    pkey, xkey = jax.random.split(key)
    params = init_params(pkey)

    # small shapes consistent with the forward: batch=2, seq=8, input_dim=1
    x = jax.random.normal(xkey, (2, 8, 1), jnp.float32)

    y = lmu_model_forward(x, params)
    y = jax.block_until_ready(y)
    assert y.shape == (2, 8, 1)

    y_ref = lmu_model_reference(x, params)
    np.testing.assert_allclose(np.asarray(y), np.asarray(y_ref), rtol=1e-4, atol=1e-4)

    print("KERNEL_OK")
</pallas_src>

<mosaic_0001>
module attributes {stable_mosaic.version = 11 : i64} {
  func.func @_lmu_chunk_kernel(%arg0: i32, %arg1: memref<8x8xf32, #tpu.memory_space<vmem>>, %arg2: memref<8x128xf32, #tpu.memory_space<vmem>>, %arg3: memref<128x128xf32, #tpu.memory_space<vmem>>, %arg4: memref<1x1xf32, #tpu.memory_space<smem>>, %arg5: memref<8x8xf32, #tpu.memory_space<vmem>>, %arg6: memref<8x128xf32, #tpu.memory_space<vmem>>) attributes {dimension_semantics = [#tpu.dimension_semantics<arbitrary>], iteration_bounds = array<i64: 1>, scalar_prefetch = 0 : i64, scratch_operands = 1 : i64, tpu.core_type = #tpu.core_type<tc>, window_params = [{transform_indices = @transform_0, window_bounds = array<i64: 8, 8>}, {pipeline_mode = #tpu.pipeline_mode<synchronous>, transform_indices = @transform_1, window_bounds = array<i64: 8, 128>}, {pipeline_mode = #tpu.pipeline_mode<synchronous>, transform_indices = @transform_2, window_bounds = array<i64: 128, 128>}, {transform_indices = @transform_3, window_bounds = array<i64: 1, 1>}, {transform_indices = @transform_4, window_bounds = array<i64: 8, 8>}]} {
    %c0_i32 = arith.constant 0 : i32
    %0 = arith.cmpi eq, %arg0, %c0_i32 : i32
    %1 = arith.extui %0 : i1 to i32
    %c0_i32_0 = arith.constant 0 : i32
    %2 = arith.cmpi ne, %1, %c0_i32_0 : i32
    scf.if %2 {
      %cst_56 = arith.constant 0.000000e+00 : f32
      %226 = vector.broadcast %cst_56 : f32 to vector<8x128xf32>
      %c0_57 = arith.constant 0 : index
      %c0_58 = arith.constant 0 : index
      %227 = vector.load %arg6[%c0_57, %c0_58] : memref<8x128xf32, #tpu.memory_space<vmem>>, vector<8x128xf32>
      tpu.vector_store %arg6[%c0_57, %c0_58], %226 {strides = array<i32>} : memref<8x128xf32, #tpu.memory_space<vmem>>, vector<8x128xf32>,
    } else {
    }
    %c0 = arith.constant 0 : index
    %c0_1 = arith.constant 0 : index
    %3 = vector.load %arg1[%c0, %c0_1] : memref<8x8xf32, #tpu.memory_space<vmem>>, vector<8x8xf32>
    %c0_2 = arith.constant 0 : index
    %c0_3 = arith.constant 0 : index
    %4 = vector.load %arg2[%c0_2, %c0_3] : memref<8x128xf32, #tpu.memory_space<vmem>>, vector<1x128xf32>
    %c1 = arith.constant 1 : index
    %c0_4 = arith.constant 0 : index
    %5 = vector.load %arg2[%c1, %c0_4] : memref<8x128xf32, #tpu.memory_space<vmem>>, vector<1x128xf32>
    %c0_5 = arith.constant 0 : index
    %c0_6 = arith.constant 0 : index
    %6 = vector.load %arg3[%c0_5, %c0_6] : memref<128x128xf32, #tpu.memory_space<vmem>>, vector<128x128xf32>
    %7 = tpu.iota {dimensions = array<i32: 1>} : vector<1x8xi32>
    %8 = tpu.iota {dimensions = array<i32: 1>} : vector<8x128xi32>
    %c64_i32 = arith.constant 64 : i32
    %9 = vector.broadcast %c64_i32 : i32 to vector<8x128xi32>
    %10 = arith.cmpi slt, %8, %9 : vector<8x128xi32>
    %c0_7 = arith.constant 0 : index
    %c0_8 = arith.constant 0 : index
    %11 = vector.load %arg6[%c0_7, %c0_8] : memref<8x128xf32, #tpu.memory_space<vmem>>, vector<8x128xf32>
    %cst = arith.constant 0.000000e+00 : f32
    %12 = vector.broadcast %cst : f32 to vector<8x8xf32>
    %c0_i32_9 = arith.constant 0 : i32
    %13 = vector.broadcast %c0_i32_9 : i32 to vector<1x8xi32>
    %14 = arith.cmpi eq, %7, %13 : vector<1x8xi32>
    %cst_10 = arith.constant 0.000000e+00 : f32
    %15 = vector.shape_cast %14 : vector<1x8xi1> to vector<1x8xi1>
    %16 = vector.broadcast %15 : vector<1x8xi1> to vector<8x8xi1>
    %17 = vector.broadcast %cst_10 : f32 to vector<8x8xf32>
    %18 = arith.select %16, %3, %17 : vector<8x8xi1>, vector<8x8xf32>
    %cst_11 = arith.constant dense<0.000000e+00> : vector<8xf32>
    %19 = vector.multi_reduction <add>, %18, %cst_11 [1] : vector<8x8xf32> to vector<8xf32>
    %20 = vector.shape_cast %19 : vector<8xf32> to vector<8x1xf32>
    %cst_12 = arith.constant dense<0.000000e+00> : vector<8x128xf32>
    %21 = tpu.matmul %11, %6, %cst_12 {dimension_numbers = #tpu.dot_dimension_numbers<[1], [0], [0], [1], [0, 0, 1, 1], [], []>} : vector<8x128xf32>, vector<128x128xf32>, vector<8x128xf32> -> vector<8x128xf32>
    %22 = vector.broadcast %20 : vector<8x1xf32> to vector<8x128xf32>
    %23 = vector.broadcast %4 : vector<1x128xf32> to vector<8x128xf32>
    %24 = arith.mulf %22, %23 : vector<8x128xf32>
    %25 = arith.addf %24, %21 : vector<8x128xf32>
    %26 = math.tanh %25 : vector<8x128xf32>
    %27 = arith.select %10, %26, %25 : vector<8x128xi1>, vector<8x128xf32>
    %28 = vector.broadcast %5 : vector<1x128xf32> to vector<8x128xf32>
    %29 = arith.mulf %27, %28 : vector<8x128xf32>
    %cst_13 = arith.constant dense<0.000000e+00> : vector<8xf32>
    %30 = vector.multi_reduction <add>, %29, %cst_13 [1] : vector<8x128xf32> to vector<8xf32>
    %31 = vector.shape_cast %30 : vector<8xf32> to vector<8x1xf32>
    %cst_14 = arith.constant 0.000000e+00 : f32
    %32 = vector.shape_cast %14 : vector<1x8xi1> to vector<1x8xi1>
    %33 = vector.broadcast %32 : vector<1x8xi1> to vector<8x8xi1>
    %34 = vector.shape_cast %31 : vector<8x1xf32> to vector<8x1xf32>
    %35 = vector.broadcast %34 : vector<8x1xf32> to vector<8x8xf32>
    %36 = vector.broadcast %cst_14 : f32 to vector<8x8xf32>
    %37 = arith.select %33, %35, %36 : vector<8x8xi1>, vector<8x8xf32>
    %38 = arith.addf %12, %37 : vector<8x8xf32>
    %c1_i32 = arith.constant 1 : i32
    %39 = vector.broadcast %c1_i32 : i32 to vector<1x8xi32>
    %40 = arith.cmpi eq, %7, %39 : vector<1x8xi32>
    %cst_15 = arith.constant 0.000000e+00 : f32
    %41 = vector.shape_cast %40 : vector<1x8xi1> to vector<1x8xi1>
    %42 = vector.broadcast %41 : vector<1x8xi1> to vector<8x8xi1>
    %43 = vector.broadcast %cst_15 : f32 to vector<8x8xf32>
    %44 = arith.select %42, %3, %43 : vector<8x8xi1>, vector<8x8xf32>
    %cst_16 = arith.constant dense<0.000000e+00> : vector<8xf32>
    %45 = vector.multi_reduction <add>, %44, %cst_16 [1] : vector<8x8xf32> to vector<8xf32>
    %46 = vector.shape_cast %45 : vector<8xf32> to vector<8x1xf32>
    %cst_17 = arith.constant dense<0.000000e+00> : vector<8x128xf32>
    %47 = tpu.matmul %27, %6, %cst_17 {dimension_numbers = #tpu.dot_dimension_numbers<[1], [0], [0], [1], [0, 0, 1, 1], [], []>} : vector<8x128xf32>, vector<128x128xf32>, vector<8x128xf32> -> vector<8x128xf32>
    %48 = vector.broadcast %46 : vector<8x1xf32> to vector<8x128xf32>
    %49 = vector.broadcast %4 : vector<1x128xf32> to vector<8x128xf32>
    %50 = arith.mulf %48, %49 : vector<8x128xf32>
    %51 = arith.addf %50, %47 : vector<8x128xf32>
    %52 = math.tanh %51 : vector<8x128xf32>
    %53 = arith.select %10, %52, %51 : vector<8x128xi1>, vector<8x128xf32>
    %54 = vector.broadcast %5 : vector<1x128xf32> to vector<8x128xf32>
    %55 = arith.mulf %53, %54 : vector<8x128xf32>
    %cst_18 = arith.constant dense<0.000000e+00> : vector<8xf32>
    %56 = vector.multi_reduction <add>, %55, %cst_18 [1] : vector<8x128xf32> to vector<8xf32>
    %57 = vector.shape_cast %56 : vector<8xf32> to vector<8x1xf32>
    %cst_19 = arith.constant 0.000000e+00 : f32
    %58 = vector.shape_cast %40 : vector<1x8xi1> to vector<1x8xi1>
    %59 = vector.broadcast %58 : vector<1x8xi1> to vector<8x8xi1>
    %60 = vector.shape_cast %57 : vector<8x1xf32> to vector<8x1xf32>
    %61 = vector.broadcast %60 : vector<8x1xf32> to vector<8x8xf32>
    %62 = vector.broadcast %cst_19 : f32 to vector<8x8xf32>
    %63 = arith.select %59, %61, %62 : vector<8x8xi1>, vector<8x8xf32>
    %64 = arith.addf %38, %63 : vector<8x8xf32>
    %c2_i32 = arith.constant 2 : i32
    %65 = vector.broadcast %c2_i32 : i32 to vector<1x8xi32>
    %66 = arith.cmpi eq, %7, %65 : vector<1x8xi32>
    %cst_20 = arith.constant 0.000000e+00 : f32
    %67 = vector.shape_cast %66 : vector<1x8xi1> to vector<1x8xi1>
    %68 = vector.broadcast %67 : vector<1x8xi1> to vector<8x8xi1>
    %69 = vector.broadcast %cst_20 : f32 to vector<8x8xf32>
    %70 = arith.select %68, %3, %69 : vector<8x8xi1>, vector<8x8xf32>
    %cst_21 = arith.constant dense<0.000000e+00> : vector<8xf32>
    %71 = vector.multi_reduction <add>, %70, %cst_21 [1] : vector<8x8xf32> to vector<8xf32>
    %72 = vector.shape_cast %71 : vector<8xf32> to vector<8x1xf32>
    %cst_22 = arith.constant dense<0.000000e+00> : vector<8x128xf32>
    %73 = tpu.matmul %53, %6, %cst_22 {dimension_numbers = #tpu.dot_dimension_numbers<[1], [0], [0], [1], [0, 0, 1, 1], [], []>} : vector<8x128xf32>, vector<128x128xf32>, vector<8x128xf32> -> vector<8x128xf32>
    %74 = vector.broadcast %72 : vector<8x1xf32> to vector<8x128xf32>
    %75 = vector.broadcast %4 : vector<1x128xf32> to vector<8x128xf32>
    %76 = arith.mulf %74, %75 : vector<8x128xf32>
    %77 = arith.addf %76, %73 : vector<8x128xf32>
    %78 = math.tanh %77 : vector<8x128xf32>
    %79 = arith.select %10, %78, %77 : vector<8x128xi1>, vector<8x128xf32>
    %80 = vector.broadcast %5 : vector<1x128xf32> to vector<8x128xf32>
    %81 = arith.mulf %79, %80 : vector<8x128xf32>
    %cst_23 = arith.constant dense<0.000000e+00> : vector<8xf32>
    %82 = vector.multi_reduction <add>, %81, %cst_23 [1] : vector<8x128xf32> to vector<8xf32>
    %83 = vector.shape_cast %82 : vector<8xf32> to vector<8x1xf32>
    %cst_24 = arith.constant 0.000000e+00 : f32
    %84 = vector.shape_cast %66 : vector<1x8xi1> to vector<1x8xi1>
    %85 = vector.broadcast %84 : vector<1x8xi1> to vector<8x8xi1>
    %86 = vector.shape_cast %83 : vector<8x1xf32> to vector<8x1xf32>
    %87 = vector.broadcast %86 : vector<8x1xf32> to vector<8x8xf32>
    %88 = vector.broadcast %cst_24 : f32 to vector<8x8xf32>
    %89 = arith.select %85, %87, %88 : vector<8x8xi1>, vector<8x8xf32>
    %90 = arith.addf %64, %89 : vector<8x8xf32>
    %c3_i32 = arith.constant 3 : i32
    %91 = vector.broadcast %c3_i32 : i32 to vector<1x8xi32>
    %92 = arith.cmpi eq, %7, %91 : vector<1x8xi32>
    %cst_25 = arith.constant 0.000000e+00 : f32
    %93 = vector.shape_cast %92 : vector<1x8xi1> to vector<1x8xi1>
    %94 = vector.broadcast %93 : vector<1x8xi1> to vector<8x8xi1>
    %95 = vector.broadcast %cst_25 : f32 to vector<8x8xf32>
    %96 = arith.select %94, %3, %95 : vector<8x8xi1>, vector<8x8xf32>
    %cst_26 = arith.constant dense<0.000000e+00> : vector<8xf32>
    %97 = vector.multi_reduction <add>, %96, %cst_26 [1] : vector<8x8xf32> to vector<8xf32>
    %98 = vector.shape_cast %97 : vector<8xf32> to vector<8x1xf32>
    %cst_27 = arith.constant dense<0.000000e+00> : vector<8x128xf32>
    %99 = tpu.matmul %79, %6, %cst_27 {dimension_numbers = #tpu.dot_dimension_numbers<[1], [0], [0], [1], [0, 0, 1, 1], [], []>} : vector<8x128xf32>, vector<128x128xf32>, vector<8x128xf32> -> vector<8x128xf32>
    %100 = vector.broadcast %98 : vector<8x1xf32> to vector<8x128xf32>
    %101 = vector.broadcast %4 : vector<1x128xf32> to vector<8x128xf32>
    %102 = arith.mulf %100, %101 : vector<8x128xf32>
    %103 = arith.addf %102, %99 : vector<8x128xf32>
    %104 = math.tanh %103 : vector<8x128xf32>
    %105 = arith.select %10, %104, %103 : vector<8x128xi1>, vector<8x128xf32>
    %106 = vector.broadcast %5 : vector<1x128xf32> to vector<8x128xf32>
    %107 = arith.mulf %105, %106 : vector<8x128xf32>
    %cst_28 = arith.constant dense<0.000000e+00> : vector<8xf32>
    %108 = vector.multi_reduction <add>, %107, %cst_28 [1] : vector<8x128xf32> to vector<8xf32>
    %109 = vector.shape_cast %108 : vector<8xf32> to vector<8x1xf32>
    %cst_29 = arith.constant 0.000000e+00 : f32
    %110 = vector.shape_cast %92 : vector<1x8xi1> to vector<1x8xi1>
    %111 = vector.broadcast %110 : vector<1x8xi1> to vector<8x8xi1>
    %112 = vector.shape_cast %109 : vector<8x1xf32> to vector<8x1xf32>
    %113 = vector.broadcast %112 : vector<8x1xf32> to vector<8x8xf32>
    %114 = vector.broadcast %cst_29 : f32 to vector<8x8xf32>
    %115 = arith.select %111, %113, %114 : vector<8x8xi1>, vector<8x8xf32>
    %116 = arith.addf %90, %115 : vector<8x8xf32>
    %c4_i32 = arith.constant 4 : i32
    %117 = vector.broadcast %c4_i32 : i32 to vector<1x8xi32>
    %118 = arith.cmpi eq, %7, %117 : vector<1x8xi32>
    %cst_30 = arith.constant 0.000000e+00 : f32
    %119 = vector.shape_cast %118 : vector<1x8xi1> to vector<1x8xi1>
    %120 = vector.broadcast %119 : vector<1x8xi1> to vector<8x8xi1>
    %121 = vector.broadcast %cst_30 : f32 to vector<8x8xf32>
    %122 = arith.select %120, %3, %121 : vector<8x8xi1>, vector<8x8xf32>
    %cst_31 = arith.constant dense<0.000000e+00> : vector<8xf32>
    %123 = vector.multi_reduction <add>, %122, %cst_31 [1] : vector<8x8xf32> to vector<8xf32>
    %124 = vector.shape_cast %123 : vector<8xf32> to vector<8x1xf32>
    %cst_32 = arith.constant dense<0.000000e+00> : vector<8x128xf32>
    %125 = tpu.matmul %105, %6, %cst_32 {dimension_numbers = #tpu.dot_dimension_numbers<[1], [0], [0], [1], [0, 0, 1, 1], [], []>} : vector<8x128xf32>, vector<128x128xf32>, vector<8x128xf32> -> vector<8x128xf32>
    %126 = vector.broadcast %124 : vector<8x1xf32> to vector<8x128xf32>
    %127 = vector.broadcast %4 : vector<1x128xf32> to vector<8x128xf32>
    %128 = arith.mulf %126, %127 : vector<8x128xf32>
    %129 = arith.addf %128, %125 : vector<8x128xf32>
    %130 = math.tanh %129 : vector<8x128xf32>
    %131 = arith.select %10, %130, %129 : vector<8x128xi1>, vector<8x128xf32>
    %132 = vector.broadcast %5 : vector<1x128xf32> to vector<8x128xf32>
    %133 = arith.mulf %131, %132 : vector<8x128xf32>
    %cst_33 = arith.constant dense<0.000000e+00> : vector<8xf32>
    %134 = vector.multi_reduction <add>, %133, %cst_33 [1] : vector<8x128xf32> to vector<8xf32>
    %135 = vector.shape_cast %134 : vector<8xf32> to vector<8x1xf32>
    %cst_34 = arith.constant 0.000000e+00 : f32
    %136 = vector.shape_cast %118 : vector<1x8xi1> to vector<1x8xi1>
    %137 = vector.broadcast %136 : vector<1x8xi1> to vector<8x8xi1>
    %138 = vector.shape_cast %135 : vector<8x1xf32> to vector<8x1xf32>
    %139 = vector.broadcast %138 : vector<8x1xf32> to vector<8x8xf32>
    %140 = vector.broadcast %cst_34 : f32 to vector<8x8xf32>
    %141 = arith.select %137, %139, %140 : vector<8x8xi1>, vector<8x8xf32>
    %142 = arith.addf %116, %141 : vector<8x8xf32>
    %c5_i32 = arith.constant 5 : i32
    %143 = vector.broadcast %c5_i32 : i32 to vector<1x8xi32>
    %144 = arith.cmpi eq, %7, %143 : vector<1x8xi32>
    %cst_35 = arith.constant 0.000000e+00 : f32
    %145 = vector.shape_cast %144 : vector<1x8xi1> to vector<1x8xi1>
    %146 = vector.broadcast %145 : vector<1x8xi1> to vector<8x8xi1>
    %147 = vector.broadcast %cst_35 : f32 to vector<8x8xf32>
    %148 = arith.select %146, %3, %147 : vector<8x8xi1>, vector<8x8xf32>
    %cst_36 = arith.constant dense<0.000000e+00> : vector<8xf32>
    %149 = vector.multi_reduction <add>, %148, %cst_36 [1] : vector<8x8xf32> to vector<8xf32>
    %150 = vector.shape_cast %149 : vector<8xf32> to vector<8x1xf32>
    %cst_37 = arith.constant dense<0.000000e+00> : vector<8x128xf32>
    %151 = tpu.matmul %131, %6, %cst_37 {dimension_numbers = #tpu.dot_dimension_numbers<[1], [0], [0], [1], [0, 0, 1, 1], [], []>} : vector<8x128xf32>, vector<128x128xf32>, vector<8x128xf32> -> vector<8x128xf32>
    %152 = vector.broadcast %150 : vector<8x1xf32> to vector<8x128xf32>
    %153 = vector.broadcast %4 : vector<1x128xf32> to vector<8x128xf32>
    %154 = arith.mulf %152, %153 : vector<8x128xf32>
    %155 = arith.addf %154, %151 : vector<8x128xf32>
    %156 = math.tanh %155 : vector<8x128xf32>
    %157 = arith.select %10, %156, %155 : vector<8x128xi1>, vector<8x128xf32>
    %158 = vector.broadcast %5 : vector<1x128xf32> to vector<8x128xf32>
    %159 = arith.mulf %157, %158 : vector<8x128xf32>
    %cst_38 = arith.constant dense<0.000000e+00> : vector<8xf32>
    %160 = vector.multi_reduction <add>, %159, %cst_38 [1] : vector<8x128xf32> to vector<8xf32>
    %161 = vector.shape_cast %160 : vector<8xf32> to vector<8x1xf32>
    %cst_39 = arith.constant 0.000000e+00 : f32
    %162 = vector.shape_cast %144 : vector<1x8xi1> to vector<1x8xi1>
    %163 = vector.broadcast %162 : vector<1x8xi1> to vector<8x8xi1>
    %164 = vector.shape_cast %161 : vector<8x1xf32> to vector<8x1xf32>
    %165 = vector.broadcast %164 : vector<8x1xf32> to vector<8x8xf32>
    %166 = vector.broadcast %cst_39 : f32 to vector<8x8xf32>
    %167 = arith.select %163, %165, %166 : vector<8x8xi1>, vector<8x8xf32>
    %168 = arith.addf %142, %167 : vector<8x8xf32>
    %c6_i32 = arith.constant 6 : i32
    %169 = vector.broadcast %c6_i32 : i32 to vector<1x8xi32>
    %170 = arith.cmpi eq, %7, %169 : vector<1x8xi32>
    %cst_40 = arith.constant 0.000000e+00 : f32
    %171 = vector.shape_cast %170 : vector<1x8xi1> to vector<1x8xi1>
    %172 = vector.broadcast %171 : vector<1x8xi1> to vector<8x8xi1>
    %173 = vector.broadcast %cst_40 : f32 to vector<8x8xf32>
    %174 = arith.select %172, %3, %173 : vector<8x8xi1>, vector<8x8xf32>
    %cst_41 = arith.constant dense<0.000000e+00> : vector<8xf32>
    %175 = vector.multi_reduction <add>, %174, %cst_41 [1] : vector<8x8xf32> to vector<8xf32>
    %176 = vector.shape_cast %175 : vector<8xf32> to vector<8x1xf32>
    %cst_42 = arith.constant dense<0.000000e+00> : vector<8x128xf32>
    %177 = tpu.matmul %157, %6, %cst_42 {dimension_numbers = #tpu.dot_dimension_numbers<[1], [0], [0], [1], [0, 0, 1, 1], [], []>} : vector<8x128xf32>, vector<128x128xf32>, vector<8x128xf32> -> vector<8x128xf32>
    %178 = vector.broadcast %176 : vector<8x1xf32> to vector<8x128xf32>
    %179 = vector.broadcast %4 : vector<1x128xf32> to vector<8x128xf32>
    %180 = arith.mulf %178, %179 : vector<8x128xf32>
    %181 = arith.addf %180, %177 : vector<8x128xf32>
    %182 = math.tanh %181 : vector<8x128xf32>
    %183 = arith.select %10, %182, %181 : vector<8x128xi1>, vector<8x128xf32>
    %184 = vector.broadcast %5 : vector<1x128xf32> to vector<8x128xf32>
    %185 = arith.mulf %183, %184 : vector<8x128xf32>
    %cst_43 = arith.constant dense<0.000000e+00> : vector<8xf32>
    %186 = vector.multi_reduction <add>, %185, %cst_43 [1] : vector<8x128xf32> to vector<8xf32>
    %187 = vector.shape_cast %186 : vector<8xf32> to vector<8x1xf32>
    %cst_44 = arith.constant 0.000000e+00 : f32
    %188 = vector.shape_cast %170 : vector<1x8xi1> to vector<1x8xi1>
    %189 = vector.broadcast %188 : vector<1x8xi1> to vector<8x8xi1>
    %190 = vector.shape_cast %187 : vector<8x1xf32> to vector<8x1xf32>
    %191 = vector.broadcast %190 : vector<8x1xf32> to vector<8x8xf32>
    %192 = vector.broadcast %cst_44 : f32 to vector<8x8xf32>
    %193 = arith.select %189, %191, %192 : vector<8x8xi1>, vector<8x8xf32>
    %194 = arith.addf %168, %193 : vector<8x8xf32>
    %c7_i32 = arith.constant 7 : i32
    %195 = vector.broadcast %c7_i32 : i32 to vector<1x8xi32>
    %196 = arith.cmpi eq, %7, %195 : vector<1x8xi32>
    %cst_45 = arith.constant 0.000000e+00 : f32
    %197 = vector.shape_cast %196 : vector<1x8xi1> to vector<1x8xi1>
    %198 = vector.broadcast %197 : vector<1x8xi1> to vector<8x8xi1>
    %199 = vector.broadcast %cst_45 : f32 to vector<8x8xf32>
    %200 = arith.select %198, %3, %199 : vector<8x8xi1>, vector<8x8xf32>
    %cst_46 = arith.constant dense<0.000000e+00> : vector<8xf32>
    %201 = vector.multi_reduction <add>, %200, %cst_46 [1] : vector<8x8xf32> to vector<8xf32>
    %202 = vector.shape_cast %201 : vector<8xf32> to vector<8x1xf32>
    %cst_47 = arith.constant dense<0.000000e+00> : vector<8x128xf32>
    %203 = tpu.matmul %183, %6, %cst_47 {dimension_numbers = #tpu.dot_dimension_numbers<[1], [0], [0], [1], [0, 0, 1, 1], [], []>} : vector<8x128xf32>, vector<128x128xf32>, vector<8x128xf32> -> vector<8x128xf32>
    %204 = vector.broadcast %202 : vector<8x1xf32> to vector<8x128xf32>
    %205 = vector.broadcast %4 : vector<1x128xf32> to vector<8x128xf32>
    %206 = arith.mulf %204, %205 : vector<8x128xf32>
    %207 = arith.addf %206, %203 : vector<8x128xf32>
    %208 = math.tanh %207 : vector<8x128xf32>
    %209 = arith.select %10, %208, %207 : vector<8x128xi1>, vector<8x128xf32>
    %210 = vector.broadcast %5 : vector<1x128xf32> to vector<8x128xf32>
    %211 = arith.mulf %209, %210 : vector<8x128xf32>
    %cst_48 = arith.constant dense<0.000000e+00> : vector<8xf32>
    %212 = vector.multi_reduction <add>, %211, %cst_48 [1] : vector<8x128xf32> to vector<8xf32>
    %213 = vector.shape_cast %212 : vector<8xf32> to vector<8x1xf32>
    %cst_49 = arith.constant 0.000000e+00 : f32
    %214 = vector.shape_cast %196 : vector<1x8xi1> to vector<1x8xi1>
    %215 = vector.broadcast %214 : vector<1x8xi1> to vector<8x8xi1>
    %216 = vector.shape_cast %213 : vector<8x1xf32> to vector<8x1xf32>
    %217 = vector.broadcast %216 : vector<8x1xf32> to vector<8x8xf32>
    %218 = vector.broadcast %cst_49 : f32 to vector<8x8xf32>
    %219 = arith.select %215, %217, %218 : vector<8x8xi1>, vector<8x8xf32>
    %220 = arith.addf %194, %219 : vector<8x8xf32>
    %c8_i32 = arith.constant 8 : i32
    %c0_50 = arith.constant 0 : index
    %c0_51 = arith.constant 0 : index
    %221 = vector.load %arg6[%c0_50, %c0_51] : memref<8x128xf32, #tpu.memory_space<vmem>>, vector<8x128xf32>
    tpu.vector_store %arg6[%c0_50, %c0_51], %209 {strides = array<i32>} : memref<8x128xf32, #tpu.memory_space<vmem>>, vector<8x128xf32>,
    %c0_52 = arith.constant 0 : index
    %c0_53 = arith.constant 0 : index
    %222 = memref.load %arg4[%c0_52, %c0_53] : memref<1x1xf32, #tpu.memory_space<smem>>
    %223 = vector.broadcast %222 : f32 to vector<8x8xf32>
    %224 = arith.addf %220, %223 : vector<8x8xf32>
    %c0_54 = arith.constant 0 : index
    %c0_55 = arith.constant 0 : index
    %225 = vector.load %arg5[%c0_54, %c0_55] : memref<8x8xf32, #tpu.memory_space<vmem>>, vector<8x8xf32>
    tpu.vector_store %arg5[%c0_54, %c0_55], %224 {strides = array<i32>} : memref<8x8xf32, #tpu.memory_space<vmem>>, vector<8x8xf32>,
    return
  }
  func.func @transform_0(%arg0: i32) -> (i32, i32) {
    %c0_i32 = arith.constant 0 : i32
    %c0_i32_0 = arith.constant 0 : i32
    return %c0_i32, %arg0 : i32, i32
  }
  func.func @transform_1(%arg0: i32) -> (i32, i32) {
    %c0_i32 = arith.constant 0 : i32
    %c0_i32_0 = arith.constant 0 : i32
    %c0_i32_1 = arith.constant 0 : i32
    return %c0_i32, %c0_i32_0 : i32, i32
  }
  func.func @transform_2(%arg0: i32) -> (i32, i32) {
    %c0_i32 = arith.constant 0 : i32
    %c0_i32_0 = arith.constant 0 : i32
    %c0_i32_1 = arith.constant 0 : i32
    return %c0_i32, %c0_i32_0 : i32, i32
  }
  func.func @transform_3(%arg0: i32) -> (i32, i32) {
    %c0_i32 = arith.constant 0 : i32
    %c0_i32_0 = arith.constant 0 : i32
    %c0_i32_1 = arith.constant 0 : i32
    return %c0_i32, %c0_i32_0 : i32, i32
  }
  func.func @transform_4(%arg0: i32) -> (i32, i32) {
    %c0_i32 = arith.constant 0 : i32
    %c0_i32_0 = arith.constant 0 : i32
    return %c0_i32, %arg0 : i32, i32
  }
}

</mosaic_0001>

<bundles_post_ra>
// kernel: lmu_model_forward.1
= control target key start
LH: loop header
LB: loop body
LE: loop exit
PB: predicated region body
PF: predicated region fallthrough
CT: control target
= control target key end

     0   :  { %v42_v2 = vlaneseq  ;;  %vm50_vm1 = vcmask 64512   ;;  %v365_v23 = vmov 0.0   ;;  %s712_s2 = inlined_call_operand.vmem [shape: f32[128,128], index: 2, kind: input, shape index: {}]   ;;  %s713_s0 = inlined_call_operand.vmem [shape: f32[8,8], index: 0, kind: input, shape index: {}]   ;;  %s714_s1 = inlined_call_operand.vmem [shape: f32[8,128], index: 1, kind: input, shape index: {}]   ;;  %s715_s3 = inlined_call_operand.<no memory space> [shape: f32[1,1], index: 3, kind: input, shape index: {}]   ;;  %s716_s4 = inlined_call_operand.vmem [shape: f32[8,8], index: 4, kind: output, shape index: {}]  }
   0x1   :  { %v394_v0 = vld [vmem:[%s712_s2 + $0x78] sm:$0xff]  ;;  %v399_v1 = vld [vmem:[%s712_s2 + $0x70] sm:$0xff]  ;;  %v406_v3 = vld [vmem:[%s712_s2 + $0x68] sm:$0xff] }
   0x2   :  { %54 = vmatpush.msra.mxu0 %v394_v0  ;;  %92 = vmatpush.msra.mxu1 %v394_v0  ;;  %v408_v4 = vand.u32 127, %v42_v2  ;;  %v417_v5 = vld [vmem:[%s712_s2 + $0x60] sm:$0xff]  ;;  %v433_v7 = vld [vmem:[%s712_s2 + $0x58] sm:$0xff]  ;;  %v450_v12 = vld [vmem:[%s712_s2 + $0x50] sm:$0xff] }
   0x3   :  { %128 = vmatpush.msra.mxu2 %v394_v0  ;;  %164 = vmatpush.msra.mxu3 %v394_v0  ;;  %v427_v6 = vld [vmem:[%s713_s0] sm:$0xff]  ;;  %v457_v13 = vld [vmem:[%s712_s2 + $0x48] sm:$0xff]  ;;  %v475_v15 = vld [vmem:[%s712_s2 + $0x38] sm:$0xff] }
   0x4   :  { %55 = vmatpush.msra.mxu0 %v399_v1  ;;  %93 = vmatpush.msra.mxu1 %v399_v1  ;;  %vm46_vm0 = vcmp.eq.s32.totalorder %v408_v4, 0  ;;  %vm193_vm2 = vcmp.eq.s32.totalorder %v408_v4, 4  ;;  %v466_v14 = vld [vmem:[%s712_s2 + $0x40] sm:$0xff]  ;;  %v484_v16 = vld [vmem:[%s712_s2 + $0x30] sm:$0xff]  ;;  %v493_v17 = vld [vmem:[%s712_s2 + $0x28] sm:$0xff]  ;;  %vm229_vm3 = vcmp.eq.s32.totalorder %v408_v4, 5 }
   0x5   :  { %129 = vmatpush.msra.mxu2 %v399_v1  ;;  %165 = vmatpush.msra.mxu3 %v399_v1  ;;  %v49_v8 = vsel %vm46_vm0, %v427_v6, 0.0  ;;  %v196_v9 = vsel %vm193_vm2, %v427_v6, 0.0  ;;  %v502_v18 = vld [vmem:[%s712_s2 + $0x20] sm:$0xff]  ;;  %v511_v19 = vld [vmem:[%s712_s2 + $0x18] sm:$0xff]  ;;  %v520_v20 = vld [vmem:[%s712_s2 + $0x10] sm:$0xff]  ;;  %v232_v24 = vsel %vm229_vm3, %v427_v6, 0.0 }
   0x6   :  { %56 = vmatpush.msra.mxu0 %v406_v3  ;;  %94 = vmatpush.msra.mxu1 %v406_v3  ;;  %v51_v10 = vsel %vm50_vm1, %v49_v8, 0.0  ;;  %v197_v11 = vsel %vm50_vm1, %v196_v9, 0.0  ;;  %v529_v21 = vld [vmem:[%s712_s2 + $0x8] sm:$0xff]  ;;  %v538_v22 = vld [vmem:[%s712_s2] sm:$0xff]  ;;  %v233_v25 = vsel %vm50_vm1, %v232_v24, 0.0  ;;  %vm85_vm4 = vcmp.eq.s32.totalorder %v408_v4, 1 }
   0x7   :  { %130 = vmatpush.msra.mxu2 %v406_v3  ;;  %166 = vmatpush.msra.mxu3 %v406_v3  ;;  %v88_v26 = vsel %vm85_vm4, %v427_v6, 0.0  ;;  %v629_v28 = vld [vmem:[%s714_s1] ss:$0 sm:$0xff]  ;;  %vm44_vm5 = vcmp.lt.s32.totalorder %v408_v4, 64  ;;  %v636_v33 = vld [vmem:[%s714_s1 + $0x1] ss:$0 sm:$0xff] }
   0x8   :  { %57 = vmatpush.msra.mxu0 %v417_v5  ;;  %95 = vmatpush.msra.mxu1 %v417_v5  ;;  %v89_v27 = vsel %vm50_vm1, %v88_v26, 0.0  ;;  %vm265_vm6 = vcmp.eq.s32.totalorder %v408_v4, 6  ;;  %vm121_vm7 = vcmp.eq.s32.totalorder %v408_v4, 2  ;;  %vm157_vm8 = vcmp.eq.s32.totalorder %v408_v4, 3 }
   0x9   :  { %52 = vadd.xlane.f32.xlu0 %v51_v10  ;;  %198 = vadd.xlane.f32.xlu2 %v197_v11  ;;  %v268_v37 = vsel %vm265_vm6, %v427_v6, 0.0  ;;  %v124_v39 = vsel %vm121_vm7, %v427_v6, 0.0  ;;  %v160_v48 = vsel %vm157_vm8, %v427_v6, 0.0  ;;  %vm301_vm9 = vcmp.eq.s32.totalorder %v408_v4, 7 }
   0xa   :  { %58 = vmatpush.msra.mxu0 %v433_v7  ;;  %96 = vmatpush.msra.mxu1 %v433_v7  ;;  %v269_v38 = vsel %vm50_vm1, %v268_v37, 0.0  ;;  %v125_v40 = vsel %vm50_vm1, %v124_v39, 0.0  ;;  %v161_v49 = vsel %vm50_vm1, %v160_v48, 0.0  ;;  %v304_v50 = vsel %vm301_vm9, %v427_v6, 0.0 }
   0xb   :  { %131 = vmatpush.msra.mxu2 %v417_v5  ;;  %167 = vmatpush.msra.mxu3 %v417_v5  ;;  %v305_v51 = vsel %vm50_vm1, %v304_v50, 0.0 }
   0xc   :  { %59 = vmatpush.msra.mxu0 %v450_v12  ;;  %97 = vmatpush.msra.mxu1 %v450_v12 }
   0xd   :  { %132 = vmatpush.msra.mxu2 %v433_v7  ;;  %168 = vmatpush.msra.mxu3 %v433_v7 }
   0xe   :  { %60 = vmatpush.msra.mxu0 %v457_v13  ;;  %98 = vmatpush.msra.mxu1 %v457_v13 }
   0xf   :  { %133 = vmatpush.msra.mxu2 %v450_v12  ;;  %169 = vmatpush.msra.mxu3 %v450_v12 }
  0x10   :  { %61 = vmatpush.msra.mxu0 %v466_v14  ;;  %99 = vmatpush.msra.mxu1 %v466_v14 }
  0x11   :  { %134 = vmatpush.msra.mxu2 %v457_v13  ;;  %170 = vmatpush.msra.mxu3 %v457_v13 }
  0x12   :  { %62 = vmatpush.msra.mxu0 %v475_v15  ;;  %100 = vmatpush.msra.mxu1 %v475_v15 }
  0x13   :  { %135 = vmatpush.msra.mxu2 %v466_v14  ;;  %171 = vmatpush.msra.mxu3 %v466_v14 }
  0x14   :  { %63 = vmatpush.msra.mxu0 %v484_v16  ;;  %101 = vmatpush.msra.mxu1 %v484_v16 }
  0x15   :  { %136 = vmatpush.msra.mxu2 %v475_v15  ;;  %172 = vmatpush.msra.mxu3 %v475_v15 }
  0x16   :  { %64 = vmatpush.msra.mxu0 %v493_v17  ;;  %102 = vmatpush.msra.mxu1 %v493_v17 }
  0x17   :  { %137 = vmatpush.msra.mxu2 %v484_v16  ;;  %173 = vmatpush.msra.mxu3 %v484_v16 }
  0x18   :  { %65 = vmatpush.msra.mxu0 %v502_v18  ;;  %103 = vmatpush.msra.mxu1 %v502_v18 }
  0x19   :  { %138 = vmatpush.msra.mxu2 %v493_v17  ;;  %174 = vmatpush.msra.mxu3 %v493_v17 }
  0x1a   :  { %66 = vmatpush.msra.mxu0 %v511_v19  ;;  %104 = vmatpush.msra.mxu1 %v511_v19 }
  0x1b   :  { %139 = vmatpush.msra.mxu2 %v502_v18  ;;  %175 = vmatpush.msra.mxu3 %v502_v18 }
  0x1c   :  { %67 = vmatpush.msra.mxu0 %v520_v20  ;;  %105 = vmatpush.msra.mxu1 %v520_v20 }
  0x1d   :  { %140 = vmatpush.msra.mxu2 %v511_v19  ;;  %176 = vmatpush.msra.mxu3 %v511_v19 }
  0x1e   :  { %68 = vmatpush.msra.mxu0 %v529_v21  ;;  %106 = vmatpush.msra.mxu1 %v529_v21 }
  0x1f   :  { %141 = vmatpush.msra.mxu2 %v520_v20  ;;  %177 = vmatpush.msra.mxu3 %v520_v20 }
  0x20   :  { %69 = vmatpush.msra.mxu0 %v538_v22  ;;  %107 = vmatpush.msra.mxu1 %v538_v22 }
  0x21   :  { %70 = vmatmul.f32.vlgmr.msra.gmra.mxu0 %v365_v23  ;;  %142 = vmatpush.msra.mxu2 %v529_v21 }
  0x22   :  { %178 = vmatpush.msra.mxu3 %v529_v21  ;;  %200 = vmatpush.msrb.mxu0 %v394_v0 }
  0x23   :  { %143 = vmatpush.msra.mxu2 %v538_v22  ;;  %236 = vmatpush.msrb.mxu1 %v394_v0 }
  0x24   :  { %179 = vmatpush.msra.mxu3 %v538_v22  ;;  %201 = vmatpush.msrb.mxu0 %v399_v1 }
  0x25   :  { %237 = vmatpush.msrb.mxu1 %v399_v1  ;;  %272 = vmatpush.msrb.mxu2 %v394_v0 }
  0x26   :  { %202 = vmatpush.msrb.mxu0 %v406_v3  ;;  %308 = vmatpush.msrb.mxu3 %v394_v0 }
  0x27   :  { %238 = vmatpush.msrb.mxu1 %v406_v3  ;;  %273 = vmatpush.msrb.mxu2 %v399_v1 }
  0x28   :  { %203 = vmatpush.msrb.mxu0 %v417_v5  ;;  %309 = vmatpush.msrb.mxu3 %v399_v1 }
  0x29   :  { %239 = vmatpush.msrb.mxu1 %v417_v5  ;;  %274 = vmatpush.msrb.mxu2 %v406_v3 }
  0x2a   :  { %204 = vmatpush.msrb.mxu0 %v433_v7  ;;  %310 = vmatpush.msrb.mxu3 %v406_v3 }
  0x2b   :  { %240 = vmatpush.msrb.mxu1 %v433_v7  ;;  %275 = vmatpush.msrb.mxu2 %v417_v5 }
  0x2c   :  { %205 = vmatpush.msrb.mxu0 %v450_v12  ;;  %311 = vmatpush.msrb.mxu3 %v417_v5 }
  0x2d   :  { %241 = vmatpush.msrb.mxu1 %v450_v12  ;;  %276 = vmatpush.msrb.mxu2 %v433_v7 }
  0x2e   :  { %206 = vmatpush.msrb.mxu0 %v457_v13  ;;  %312 = vmatpush.msrb.mxu3 %v433_v7 }
  0x2f   :  { %242 = vmatpush.msrb.mxu1 %v457_v13  ;;  %277 = vmatpush.msrb.mxu2 %v450_v12 }
  0x30   :  { %207 = vmatpush.msrb.mxu0 %v466_v14  ;;  %313 = vmatpush.msrb.mxu3 %v450_v12 }
  0x31   :  { %243 = vmatpush.msrb.mxu1 %v466_v14  ;;  %278 = vmatpush.msrb.mxu2 %v457_v13 }
  0x32   :  { %208 = vmatpush.msrb.mxu0 %v475_v15  ;;  %314 = vmatpush.msrb.mxu3 %v457_v13 }
  0x33   :  { %244 = vmatpush.msrb.mxu1 %v475_v15  ;;  %279 = vmatpush.msrb.mxu2 %v466_v14 }
  0x34   :  { %209 = vmatpush.msrb.mxu0 %v484_v16  ;;  %315 = vmatpush.msrb.mxu3 %v466_v14 }
  0x35   :  { %245 = vmatpush.msrb.mxu1 %v484_v16  ;;  %280 = vmatpush.msrb.mxu2 %v475_v15 }
  0x36   :  { %210 = vmatpush.msrb.mxu0 %v493_v17  ;;  %316 = vmatpush.msrb.mxu3 %v475_v15 }
  0x37   :  { %246 = vmatpush.msrb.mxu1 %v493_v17  ;;  %281 = vmatpush.msrb.mxu2 %v484_v16 }
  0x38   :  { %211 = vmatpush.msrb.mxu0 %v502_v18  ;;  %317 = vmatpush.msrb.mxu3 %v484_v16 }
  0x39   :  { %247 = vmatpush.msrb.mxu1 %v502_v18  ;;  %282 = vmatpush.msrb.mxu2 %v493_v17 }
  0x3a   :  { %212 = vmatpush.msrb.mxu0 %v511_v19  ;;  %318 = vmatpush.msrb.mxu3 %v493_v17 }
  0x3b   :  { %248 = vmatpush.msrb.mxu1 %v511_v19  ;;  %283 = vmatpush.msrb.mxu2 %v502_v18 }
  0x3c   :  { %213 = vmatpush.msrb.mxu0 %v520_v20  ;;  %319 = vmatpush.msrb.mxu3 %v502_v18 }
  0x3d   :  { %249 = vmatpush.msrb.mxu1 %v520_v20  ;;  %284 = vmatpush.msrb.mxu2 %v511_v19 }
  0x3e   :  { %214 = vmatpush.msrb.mxu0 %v529_v21  ;;  %320 = vmatpush.msrb.mxu3 %v511_v19 }
  0x3f   :  { %250 = vmatpush.msrb.mxu1 %v529_v21  ;;  %285 = vmatpush.msrb.mxu2 %v520_v20 }
  0x40   :  { %215 = vmatpush.msrb.mxu0 %v538_v22  ;;  %321 = vmatpush.msrb.mxu3 %v520_v20 }
  0x41   :  { %251 = vmatpush.msrb.mxu1 %v538_v22  ;;  %286 = vmatpush.msrb.mxu2 %v529_v21 }
  0x42   :  { %322 = vmatpush.msrb.mxu3 %v529_v21  ;;  %234 = vadd.xlane.f32.xlu2 %v233_v25 }
  0x43   :  { %287 = vmatpush.msrb.mxu2 %v538_v22  ;;  %90 = vadd.xlane.f32.xlu0 %v89_v27 }
  0x44   :  { %323 = vmatpush.msrb.mxu3 %v538_v22  ;;  %126 = vadd.xlane.f32.xlu1 %v125_v40 }
  0x4b   :  { %270 = vadd.xlane.f32.xlu0 %v269_v38 }
  0x4c   :  { %162 = vadd.xlane.f32.xlu1 %v161_v49 }
  0x54   :  { %306 = vadd.xlane.f32.xlu1 %v305_v51 }
  0x7c   :  { %v53_v29 = vpop.xlane.xlu0 %52  ;;  %v199_v2 = vpop.xlane.xlu2 %198 }
  0x7d   :  { %v75_v30 = vmul.f32 %v629_v28, %v53_v29  ;;  %v220_v3 = vmul.f32 %v629_v28, %v199_v2 }
  0x9e   :  { %v71_v31 = vpop.f32.mrf.mxu0 }
  0x9f   :  { %v76_v32 = vadd.f32 %v75_v30, %v71_v31 }
  0xa1   :  { %349 = vtanh.f32 %v76_v32 }
  0xa7   :  { %v350_v34 = vpop.eup %349 }
  0xa8   :  { %v78_v35 = vsel %vm44_vm5, %v350_v34, %v76_v32 }
  0xa9   :  { %108 = vmatmul.f32.vlgmr.msra.gmra.mxu1 %v78_v35  ;;  %v80_v36 = vmul.f32 %v636_v33, %v78_v35 }
  0xab   :  { %81 = vadd.xlane.f32.xlu2 %v80_v36 }
  0xb5   :  { %v235_v10 = vpop.xlane.xlu2 %234 }
  0xb6   :  { %v91_v41 = vpop.xlane.xlu0 %90  ;;  %v256_v11 = vmul.f32 %v629_v28, %v235_v10 }
  0xb7   :  { %v112_v42 = vmul.f32 %v629_v28, %v91_v41  ;;  %v127_v52 = vpop.xlane.xlu1 %126 }
  0xb8   :  { %v148_v53 = vmul.f32 %v629_v28, %v127_v52  ;;  %v339_v52 = vstv %s715_s3 }
  0xbe   :  { %v271_v17 = vpop.xlane.xlu0 %270 }
  0xbf   :  { %v163_v59 = vpop.xlane.xlu1 %162  ;;  %v292_v18 = vmul.f32 %v629_v28, %v271_v17 }
  0xc0   :  { %v184_v60 = vmul.f32 %v629_v28, %v163_v59 }
  0xc7   :  { %v307_v24 = vpop.xlane.xlu1 %306 }
  0xc8   :  { %v328_v25 = vmul.f32 %v629_v28, %v307_v24 }
 0x11e   :  { %v82_v32 = vpop.xlane.xlu2 %81 }
 0x11f   :  { %v83_v28 = vsel %vm46_vm0, %v82_v32, 0.0 }
 0x126   :  { %v109_v43 = vpop.f32.mrf.mxu1 }
 0x127   :  { %v113_v44 = vadd.f32 %v112_v42, %v109_v43 }
 0x129   :  { %351 = vtanh.f32 %v113_v44 }
 0x12f   :  { %v352_v45 = vpop.eup %351 }
 0x130   :  { %v115_v46 = vsel %vm44_vm5, %v352_v45, %v113_v44 }
 0x131   :  { %144 = vmatmul.f32.vlgmr.msra.gmra.mxu2 %v115_v46  ;;  %v116_v47 = vmul.f32 %v636_v33, %v115_v46 }
 0x133   :  { %117 = vadd.xlane.f32.xlu0 %v116_v47 }
 0x1a6   :  { %v118_v34 = vpop.xlane.xlu0 %117 }
 0x1a7   :  { %v119_v37 = vsel %vm85_vm4, %v118_v34, 0.0 }
 0x1a8   :  { %v120_v39 = vadd.f32 %v119_v37, %v83_v28 }
 0x1b4   :  { %v145_v54 = vpop.f32.mrf.mxu2 }
 0x1b5   :  { %v149_v55 = vadd.f32 %v148_v53, %v145_v54 }
 0x1b7   :  { %353 = vtanh.f32 %v149_v55 }
 0x1bd   :  { %v354_v56 = vpop.eup %353 }
 0x1be   :  { %v151_v57 = vsel %vm44_vm5, %v354_v56, %v149_v55 }
 0x1bf   :  { %180 = vmatmul.f32.vlgmr.msra.gmra.mxu3 %v151_v57  ;;  %v152_v58 = vmul.f32 %v636_v33, %v151_v57 }
 0x1c1   :  { %153 = vadd.xlane.f32.xlu1 %v152_v58 }
 0x234   :  { %v154_v35 = vpop.xlane.xlu1 %153 }
 0x235   :  { %v155_v38 = vsel %vm121_vm7, %v154_v35, 0.0 }
 0x242   :  { %v181_v61 = vpop.f32.mrf.mxu3 }
 0x243   :  { %v185_v62 = vadd.f32 %v184_v60, %v181_v61 }
 0x245   :  { %355 = vtanh.f32 %v185_v62 }
 0x24b   :  { %v356_v63 = vpop.eup %355 }
 0x24c   :  { %v187_v0 = vsel %vm44_vm5, %v356_v63, %v185_v62 }
 0x24d   :  { %216 = vmatmul.f32.vlgmr.msrb.gmra.mxu0 %v187_v0  ;;  %v188_v1 = vmul.f32 %v636_v33, %v187_v0 }
 0x24f   :  { %189 = vadd.xlane.f32.xlu2 %v188_v1 }
 0x2c2   :  { %v190_v36 = vpop.xlane.xlu2 %189 }
 0x2c3   :  { %v191_v41 = vsel %vm157_vm8, %v190_v36, 0.0 }
 0x2ca   :  { %v217_v5 = vpop.f32.mrf.mxu0 }
 0x2cb   :  { %v221_v6 = vadd.f32 %v220_v3, %v217_v5 }
 0x2cd   :  { %357 = vtanh.f32 %v221_v6 }
 0x2d3   :  { %v358_v7 = vpop.eup %357 }
 0x2d4   :  { %v223_v8 = vsel %vm44_vm5, %v358_v7, %v221_v6 }
 0x2d5   :  { %252 = vmatmul.f32.vlgmr.msrb.gmra.mxu1 %v223_v8  ;;  %v224_v9 = vmul.f32 %v636_v33, %v223_v8 }
 0x2d7   :  { %225 = vadd.xlane.f32.xlu0 %v224_v9 }
 0x34a   :  { %v226_v40 = vpop.xlane.xlu0 %225 }
 0x34b   :  { %v227_v43 = vsel %vm193_vm2, %v226_v40, 0.0 }
 0x352   :  { %v253_v12 = vpop.f32.mrf.mxu1 }
 0x353   :  { %v257_v13 = vadd.f32 %v256_v11, %v253_v12 }
 0x355   :  { %359 = vtanh.f32 %v257_v13 }
 0x35b   :  { %v360_v14 = vpop.eup %359 }
 0x35c   :  { %v259_v15 = vsel %vm44_vm5, %v360_v14, %v257_v13 }
 0x35d   :  { %288 = vmatmul.f32.vlgmr.msrb.gmra.mxu2 %v259_v15  ;;  %v260_v16 = vmul.f32 %v636_v33, %v259_v15 }
 0x35f   :  { %261 = vadd.xlane.f32.xlu1 %v260_v16 }
 0x3d2   :  { %v262_v42 = vpop.xlane.xlu1 %261 }
 0x3d3   :  { %v263_v46 = vsel %vm229_vm3, %v262_v42, 0.0 }
 0x3e0   :  { %v289_v19 = vpop.f32.mrf.mxu2 }
 0x3e1   :  { %v293_v20 = vadd.f32 %v292_v18, %v289_v19 }
 0x3e3   :  { %361 = vtanh.f32 %v293_v20 }
 0x3e9   :  { %v362_v21 = vpop.eup %361 }
 0x3ea   :  { %v295_v22 = vsel %vm44_vm5, %v362_v21, %v293_v20 }
 0x3eb   :  { %324 = vmatmul.f32.vlgmr.msrb.gmra.mxu3 %v295_v22  ;;  %v296_v23 = vmul.f32 %v636_v33, %v295_v22 }
 0x3ed   :  { %297 = vadd.xlane.f32.xlu2 %v296_v23 }
 0x460   :  { %v298_v45 = vpop.xlane.xlu2 %297 }
 0x461   :  { %v299_v48 = vsel %vm265_vm6, %v298_v45, 0.0 }
 0x46e   :  { %v325_v26 = vpop.f32.mrf.mxu3 }
 0x46f   :  { %v329_v27 = vadd.f32 %v328_v25, %v325_v26 }
 0x471   :  { %363 = vtanh.f32 %v329_v27 }
 0x477   :  { %v364_v29 = vpop.eup %363 }
 0x478   :  { %v331_v30 = vsel %vm44_vm5, %v364_v29, %v329_v27 }
 0x479   :  { %v332_v31 = vmul.f32 %v636_v33, %v331_v30  ;;  %v156_v33 = vadd.f32 %v155_v38, %v120_v39 }
 0x47b   :  { %333 = vadd.xlane.f32.xlu0 %v332_v31  ;;  %v192_v44 = vadd.f32 %v191_v41, %v156_v33 }
 0x47d   :  { %v228_v47 = vadd.f32 %v227_v43, %v192_v44 }
 0x47f   :  { %v264_v49 = vadd.f32 %v263_v46, %v228_v47 }
 0x481   :  { %v300_v50 = vadd.f32 %v299_v48, %v264_v49 }
 0x4ee   :  { %v334_v51 = vpop.xlane.xlu0 %333 }
 0x4ef   :  { %v335_v53 = vsel %vm301_vm9, %v334_v51, 0.0 }
 0x4f0   :  { %v336_v54 = vadd.f32 %v335_v53, %v300_v50 }
 0x4f2   :  { %v340_v55 = vadd.f32 %v339_v52, %v336_v54 }
 0x4f4   :  { %341 = vst.msk [vmem:[%s716_s4] sm:$0xff] %vm50_vm1, %v340_v55 }

</bundles_post_ra>
